<compile_context>
chip_gen: v6e
topology: v6e:2x2x1
jax: 0.10.0
libtpu: 0.0.40
codegen_flags: <defaults>
</compile_context>

<pallas_src>
import jax
import jax.numpy as jnp
from jax.experimental import pallas as pl
from jax.experimental.pallas import tpu as pltpu


def _mlp_kernel(x_ref, w1_ref, b1_ref, w2_ref, b2_ref, w3_ref, b3_ref, o_ref):
    # x_ref: (TM, input_dim) in the caller's dtype.  Weights are PyTorch
    # (out_features, in_features) layout, stored in the MXU dtype (bf16 by default).
    x = x_ref[...].astype(w1_ref.dtype)        # in-kernel cast; hidden under the x DMA

    # Layer 1: relu(W1 @ x^T + b1) -> (l1, TM).
    # NT dot_general (contract last dim of both operands): flash-attention Q.K^T form;
    # the big streamed x tile is never moved through the XLU.
    h1 = jax.lax.dot_general(
        w1_ref[...], x,
        dimension_numbers=(((1,), (1,)), ((), ())),
        preferred_element_type=jnp.float32,
    )
    h1 = jnp.maximum(h1 + b1_ref[...], 0.0)    # f32 bias + ReLU
    # Dropout(0.3) -> identity in eval mode.

    # Layer 2: relu(W2 @ h1 + b2) -> (l2, TM).
    # Cast h1 down to the weight dtype so the MXU does a single bf16 pass;
    # accumulation stays f32 via preferred_element_type.
    h2 = jnp.dot(w2_ref[...], h1.astype(w2_ref.dtype),
                 preferred_element_type=jnp.float32)
    h2 = jnp.maximum(h2 + b2_ref[...], 0.0)
    # Dropout(0.3) -> identity in eval mode.

    # Layer 3: (l2 -> 1) as VPU multiply + cross-sublane reduce -> lane-dense (1, TM).
    logits = jnp.sum(h2 * w3_ref[...].astype(jnp.float32), axis=0, keepdims=True)
    logits = logits + b3_ref[0, 0]             # b3 is an SMEM scalar
    o_ref[...] = jax.nn.sigmoid(logits).astype(o_ref.dtype)


def _round_up(n, m):
    return pl.cdiv(n, m) * m


def _choose_tile(B, input_dim, x_itemsize, block_batch):
    """Batch tile (multiple of 128 = lane width of the (1, TM) output block)."""
    tm = _round_up(block_batch, 128)
    # v7x megacore: keep >= ~4 grid steps for large batches so both TCs pipeline.
    tm = min(tm, max(128, _round_up(pl.cdiv(B, 4), 128)))
    # Never exceed the (padded) batch itself.
    tm = min(tm, _round_up(B, 128))
    # VMEM budget (v7x-safe): the (tm, input_dim) x block is lane-padded to a
    # multiple of 128 lanes, so each pipeline buffer costs tm * padded_cols *
    # itemsize bytes, x2 for double buffering.  Keep the streamed-x footprint
    # under ~24 MiB (v7x scoped default is 32 MiB; v5e/v6e have more headroom).
    padded_cols = _round_up(input_dim, 128)
    cap_rows = (24 * 1024 * 1024) // (2 * padded_cols * x_itemsize)
    tm = min(tm, max(128, (cap_rows // 128) * 128))
    return tm


def binary_classifier_forward(x, params, *, block_batch=8192):
    """x: (B, input_dim), any float dtype (DMA'd as-is; cast in-kernel).
    params: PyTorch-layout weights from init_params. Returns (B, 1) f32."""
    B, input_dim = x.shape
    l1, l2 = params["W1"].shape[0], params["W2"].shape[0]

    tm = _choose_tile(B, input_dim, jnp.dtype(x.dtype).itemsize, block_batch)
    num_tiles = pl.cdiv(B, tm)
    b_pad = num_tiles * tm          # output is padded; last *input* block is partial

    out_t = pl.pallas_call(
        _mlp_kernel,
        out_shape=jax.ShapeDtypeStruct((1, b_pad), jnp.float32),
        grid=(num_tiles,),
        in_specs=[
            # x tile, pipelined (double-buffered) over the batch; ragged tail reads
            # out-of-bounds rows (row-independent math, sliced off below).
            pl.BlockSpec((tm, input_dim), lambda i: (i, 0)),
            pl.BlockSpec((l1, input_dim), lambda i: (0, 0)),   # W1 (resident)
            pl.BlockSpec((l1, 1), lambda i: (0, 0)),           # b1 (f32)
            pl.BlockSpec((l2, l1), lambda i: (0, 0)),          # W2
            pl.BlockSpec((l2, 1), lambda i: (0, 0)),           # b2 (f32)
            pl.BlockSpec((l2, 1), lambda i: (0, 0)),           # W3 as a column
            pl.BlockSpec(memory_space=pltpu.MemorySpace.SMEM), # b3 scalar in SMEM
        ],
        out_specs=pl.BlockSpec((1, tm), lambda i: (0, i)),     # lane-dense output block
        compiler_params=pltpu.CompilerParams(
            dimension_semantics=("parallel",),                 # v7x: shard batch over 2 TCs
        ),
    )(x, params["W1"], params["b1"], params["W2"], params["b2"],
      params["W3"], params["b3"])

    return out_t[0, :B].reshape(B, 1)


def init_params(key, input_dim, l1, l2, dtype=jnp.bfloat16):
    """PyTorch-style init & layout: W is (out_features, in_features), uniform +/- 1/sqrt(fan_in).
    Weights default to bf16 on ALL generations (halves the dominant HBM bytes and uses the
    bf16-native MXU path; v5e benefits most).  Biases stay f32 so all elementwise math is f32
    (v5e has no bf16 VPU/EUP).  b3 is a (1,1) f32 SMEM scalar."""
    ks = jax.random.split(key, 6)

    def lin(kw, kb, fan_in, fan_out):
        bound = 1.0 / jnp.sqrt(fan_in)
        W = jax.random.uniform(kw, (fan_out, fan_in), jnp.float32, -bound, bound)
        b = jax.random.uniform(kb, (fan_out, 1), jnp.float32, -bound, bound)
        return W.astype(dtype), b

    W1, b1 = lin(ks[0], ks[1], input_dim, l1)
    W2, b2 = lin(ks[2], ks[3], l1, l2)
    W3t, b3 = lin(ks[4], ks[5], l2, 1)                    # PyTorch W3 is (1, l2); b3 is (1, 1)
    W3 = W3t.reshape(l2, 1).astype(dtype)                 # stored as a column for the reduce
    return {"W1": W1, "b1": b1, "W2": W2, "b2": b2, "W3": W3, "b3": b3}


def _reference(x, p):
    """Pure-JAX reference mirroring the kernel's dtype policy (casts to weight dtype,
    f32 accumulation) so tolerances can stay tight."""
    f32 = lambda a: a.astype(jnp.float32)
    xc = f32(x.astype(p["W1"].dtype))
    h1 = jnp.maximum(jnp.dot(xc, f32(p["W1"]).T, precision="highest") + f32(p["b1"]).T, 0.0)
    h1c = f32(h1.astype(p["W2"].dtype))
    h2 = jnp.maximum(jnp.dot(h1c, f32(p["W2"]).T, precision="highest") + f32(p["b2"]).T, 0.0)
    logits = jnp.dot(h2, f32(p["W3"]), precision="highest") + p["b3"]
    return jax.nn.sigmoid(logits)


if __name__ == "__main__":
    key = jax.random.PRNGKey(0)
    k_x, k_p = jax.random.split(key)
    input_dim, l1, l2 = 32, 64, 32

    # 1) Small batch, f32 weights, single (partial) tile.
    params_f32 = init_params(k_p, input_dim, l1, l2, dtype=jnp.float32)
    x_small = jax.random.normal(k_x, (8, input_dim), jnp.float32)
    out = jax.block_until_ready(binary_classifier_forward(x_small, params_f32))
    ref = _reference(x_small, params_f32)
    assert out.shape == (8, 1), out.shape
    assert jnp.allclose(out, ref, atol=1e-5, rtol=1e-5), jnp.abs(out - ref).max()

    # 2) Ragged batch spanning several grid steps (exercises the partial last input
    #    block + pipelining); f32 weights.
    x_big = jax.random.normal(k_x, (300, input_dim), jnp.float32)
    out_big = jax.block_until_ready(
        binary_classifier_forward(x_big, params_f32, block_batch=128))
    ref_big = _reference(x_big, params_f32)
    assert out_big.shape == (300, 1), out_big.shape
    assert jnp.allclose(out_big, ref_big, atol=1e-5, rtol=1e-5), jnp.abs(out_big - ref_big).max()

    # 3) Default bf16 weights with f32 x DMA'd as-is and cast in-kernel
    #    (the recommended deployment path on all generations).
    params_bf16 = init_params(k_p, input_dim, l1, l2)     # default dtype = bf16
    out_bf16 = jax.block_until_ready(
        binary_classifier_forward(x_big, params_bf16, block_batch=128))
    ref_bf16 = _reference(x_big, params_bf16)
    assert out_bf16.shape == (300, 1), out_bf16.shape
    assert jnp.allclose(out_bf16, ref_bf16, atol=5e-3, rtol=0), jnp.abs(out_bf16 - ref_bf16).max()

    # 4) Large-batch path with the default 8192-row tile (multiple grid steps).
    x_large = jax.random.normal(k_x, (20000, input_dim), jnp.float32)
    out_large = jax.block_until_ready(binary_classifier_forward(x_large, params_bf16))
    ref_large = _reference(x_large, params_bf16)
    assert out_large.shape == (20000, 1), out_large.shape
    assert jnp.allclose(out_large, ref_large, atol=5e-3, rtol=0), jnp.abs(out_large - ref_large).max()

    print("KERNEL_OK")
</pallas_src>

<mosaic_0001>
module attributes {stable_mosaic.version = 11 : i64} {
  func.func @_mlp_kernel(%arg0: i32, %arg1: memref<128x32xf32, #tpu.memory_space<vmem>>, %arg2: memref<64x32xf32, #tpu.memory_space<vmem>>, %arg3: memref<64x1xf32, #tpu.memory_space<vmem>>, %arg4: memref<32x64xf32, #tpu.memory_space<vmem>>, %arg5: memref<32x1xf32, #tpu.memory_space<vmem>>, %arg6: memref<32x1xf32, #tpu.memory_space<vmem>>, %arg7: memref<1x1xf32, #tpu.memory_space<smem>>, %arg8: memref<1x128xf32, #tpu.memory_space<vmem>>) attributes {dimension_semantics = [#tpu.dimension_semantics<parallel>], iteration_bounds = array<i64: 1>, scalar_prefetch = 0 : i64, scratch_operands = 0 : i64, tpu.core_type = #tpu.core_type<tc>, window_params = [{transform_indices = @transform_0, window_bounds = array<i64: 128, 32>}, {pipeline_mode = #tpu.pipeline_mode<synchronous>, transform_indices = @transform_1, window_bounds = array<i64: 64, 32>}, {pipeline_mode = #tpu.pipeline_mode<synchronous>, transform_indices = @transform_2, window_bounds = array<i64: 64, 1>}, {pipeline_mode = #tpu.pipeline_mode<synchronous>, transform_indices = @transform_3, window_bounds = array<i64: 32, 64>}, {pipeline_mode = #tpu.pipeline_mode<synchronous>, transform_indices = @transform_4, window_bounds = array<i64: 32, 1>}, {pipeline_mode = #tpu.pipeline_mode<synchronous>, transform_indices = @transform_5, window_bounds = array<i64: 32, 1>}, {transform_indices = @transform_6, window_bounds = array<i64: 1, 1>}, {transform_indices = @transform_7, window_bounds = array<i64: 1, 128>}]} {
    %c0 = arith.constant 0 : index
    %c0_0 = arith.constant 0 : index
    %0 = vector.load %arg1[%c0, %c0_0] : memref<128x32xf32, #tpu.memory_space<vmem>>, vector<128x32xf32>
    %c0_1 = arith.constant 0 : index
    %c0_2 = arith.constant 0 : index
    %1 = vector.load %arg2[%c0_1, %c0_2] : memref<64x32xf32, #tpu.memory_space<vmem>>, vector<64x32xf32>
    %cst = arith.constant dense<0.000000e+00> : vector<64x128xf32>
    %2 = tpu.matmul %1, %0, %cst {dimension_numbers = #tpu.dot_dimension_numbers<[1], [1], [0], [0], [0, 0, 1, 0], [], []>} : vector<64x32xf32>, vector<128x32xf32>, vector<64x128xf32> -> vector<64x128xf32>
    %c0_3 = arith.constant 0 : index
    %c0_4 = arith.constant 0 : index
    %3 = vector.load %arg3[%c0_3, %c0_4] : memref<64x1xf32, #tpu.memory_space<vmem>>, vector<64x1xf32>
    %4 = vector.broadcast %3 : vector<64x1xf32> to vector<64x128xf32>
    %5 = arith.addf %2, %4 : vector<64x128xf32>
    %cst_5 = arith.constant 0.000000e+00 : f32
    %6 = vector.broadcast %cst_5 : f32 to vector<64x128xf32>
    %7 = arith.maximumf %5, %6 : vector<64x128xf32>
    %c0_6 = arith.constant 0 : index
    %c0_7 = arith.constant 0 : index
    %8 = vector.load %arg4[%c0_6, %c0_7] : memref<32x64xf32, #tpu.memory_space<vmem>>, vector<32x64xf32>
    %cst_8 = arith.constant dense<0.000000e+00> : vector<32x128xf32>
    %9 = tpu.matmul %8, %7, %cst_8 {dimension_numbers = #tpu.dot_dimension_numbers<[1], [0], [0], [1], [0, 0, 1, 1], [], []>} : vector<32x64xf32>, vector<64x128xf32>, vector<32x128xf32> -> vector<32x128xf32>
    %c0_9 = arith.constant 0 : index
    %c0_10 = arith.constant 0 : index
    %10 = vector.load %arg5[%c0_9, %c0_10] : memref<32x1xf32, #tpu.memory_space<vmem>>, vector<32x1xf32>
    %11 = vector.broadcast %10 : vector<32x1xf32> to vector<32x128xf32>
    %12 = arith.addf %9, %11 : vector<32x128xf32>
    %cst_11 = arith.constant 0.000000e+00 : f32
    %13 = vector.broadcast %cst_11 : f32 to vector<32x128xf32>
    %14 = arith.maximumf %12, %13 : vector<32x128xf32>
    %c0_12 = arith.constant 0 : index
    %c0_13 = arith.constant 0 : index
    %15 = vector.load %arg6[%c0_12, %c0_13] : memref<32x1xf32, #tpu.memory_space<vmem>>, vector<32x1xf32>
    %16 = vector.broadcast %15 : vector<32x1xf32> to vector<32x128xf32>
    %17 = arith.mulf %14, %16 : vector<32x128xf32>
    %cst_14 = arith.constant dense<0.000000e+00> : vector<128xf32>
    %18 = vector.multi_reduction <add>, %17, %cst_14 [0] : vector<32x128xf32> to vector<128xf32>
    %19 = vector.shape_cast %18 : vector<128xf32> to vector<1x128xf32>
    %c0_15 = arith.constant 0 : index
    %c0_16 = arith.constant 0 : index
    %20 = memref.load %arg7[%c0_15, %c0_16] : memref<1x1xf32, #tpu.memory_space<smem>>
    %21 = vector.broadcast %20 : f32 to vector<1x128xf32>
    %22 = arith.addf %19, %21 : vector<1x128xf32>
    %23 = arith.negf %22 : vector<1x128xf32>
    %24 = math.exp %23 : vector<1x128xf32>
    %cst_17 = arith.constant 1.000000e+00 : f32
    %25 = vector.broadcast %cst_17 : f32 to vector<1x128xf32>
    %26 = arith.addf %25, %24 : vector<1x128xf32>
    %27 = arith.divf %25, %26 : vector<1x128xf32>
    %c0_18 = arith.constant 0 : index
    %c0_19 = arith.constant 0 : index
    %28 = vector.load %arg8[%c0_18, %c0_19] : memref<1x128xf32, #tpu.memory_space<vmem>>, vector<1x128xf32>
    tpu.vector_store %arg8[%c0_18, %c0_19], %27 {strides = array<i32>} : memref<1x128xf32, #tpu.memory_space<vmem>>, vector<1x128xf32>,
    return
  }
  func.func @transform_0(%arg0: i32) -> (i32, i32) {
    %c0_i32 = arith.constant 0 : i32
    %c0_i32_0 = arith.constant 0 : i32
    return %arg0, %c0_i32 : i32, i32
  }
  func.func @transform_1(%arg0: i32) -> (i32, i32) {
    %c0_i32 = arith.constant 0 : i32
    %c0_i32_0 = arith.constant 0 : i32
    %c0_i32_1 = arith.constant 0 : i32
    return %c0_i32, %c0_i32_0 : i32, i32
  }
  func.func @transform_2(%arg0: i32) -> (i32, i32) {
    %c0_i32 = arith.constant 0 : i32
    %c0_i32_0 = arith.constant 0 : i32
    %c0_i32_1 = arith.constant 0 : i32
    return %c0_i32, %c0_i32_0 : i32, i32
  }
  func.func @transform_3(%arg0: i32) -> (i32, i32) {
    %c0_i32 = arith.constant 0 : i32
    %c0_i32_0 = arith.constant 0 : i32
    %c0_i32_1 = arith.constant 0 : i32
    return %c0_i32, %c0_i32_0 : i32, i32
  }
  func.func @transform_4(%arg0: i32) -> (i32, i32) {
    %c0_i32 = arith.constant 0 : i32
    %c0_i32_0 = arith.constant 0 : i32
    %c0_i32_1 = arith.constant 0 : i32
    return %c0_i32, %c0_i32_0 : i32, i32
  }
  func.func @transform_5(%arg0: i32) -> (i32, i32) {
    %c0_i32 = arith.constant 0 : i32
    %c0_i32_0 = arith.constant 0 : i32
    %c0_i32_1 = arith.constant 0 : i32
    return %c0_i32, %c0_i32_0 : i32, i32
  }
  func.func @transform_6(%arg0: i32) -> (i32, i32) {
    %c0_i32 = arith.constant 0 : i32
    %c0_i32_0 = arith.constant 0 : i32
    %c0_i32_1 = arith.constant 0 : i32
    return %c0_i32, %c0_i32_0 : i32, i32
  }
  func.func @transform_7(%arg0: i32) -> (i32, i32) {
    %c0_i32 = arith.constant 0 : i32
    %c0_i32_0 = arith.constant 0 : i32
    return %c0_i32, %arg0 : i32, i32
  }
}

</mosaic_0001>

<bundles_post_ra>
// kernel: tpu_custom_call.1
= control target key start
LH: loop header
LB: loop body
LE: loop exit
PB: predicated region body
PF: predicated region fallthrough
CT: control target
= control target key end

     0   :  { %vm100_vm0 = vcmask 261120   ;;  %v638_v2 = vmov 0   ;;  %s862_s0 = inlined_call_operand.vmem [shape: f32[8,32], index: 0, kind: input, shape index: {}]   ;;  %s863_s1 = inlined_call_operand.vmem [shape: f32[64,32], index: 1, kind: input, shape index: {}]   ;;  %s864_s2 = inlined_call_operand.vmem [shape: f32[64,1], index: 2, kind: input, shape index: {}]   ;;  %s865_s3 = inlined_call_operand.vmem [shape: f32[32,64], index: 3, kind: input, shape index: {}]   ;;  %s866_s4 = inlined_call_operand.vmem [shape: f32[32,1], index: 4, kind: input, shape index: {}]   ;;  %s867_s5 = inlined_call_operand.vmem [shape: f32[32,1], index: 5, kind: input, shape index: {}]   ;;  %s868_s6 = inlined_call_operand.<no memory space> [shape: f32[1,1], index: 6, kind: input, shape index: {}]   ;;  %s869_s7 = inlined_call_operand.hbm [shape: f32[1,128], index: 7, kind: output, shape index: {}]  }
   0x1   :  { %v43_v0 = vld [vmem:[%s862_s0 + $0x78] sm:$0xff]  ;;  %v42_v1 = vld [vmem:[%s862_s0 + $0x70] sm:$0xff]  ;;  %610 = vset.pattern.permute.xlu0 %v638_v2  ;;  %611 = vset.pattern.permute.xlu1 %v638_v2  ;;  %v41_v3 = vld [vmem:[%s862_s0 + $0x68] sm:$0xff] }
   0x2   :  { %542 = vmatprep.subr.msk.mxu0 %vm100_vm0, %v43_v0  ;;  %v44_v4 = vld [vmem:[%s863_s1] sm:$0xff]  ;;  %v59_v6 = vld [vmem:[%s864_s2 + $0x38] sm:$0xff]  ;;  %v57_v7 = vld [vmem:[%s864_s2 + $0x28] sm:$0xff] }
   0x3   :  { %543 = vmatpush3.xpose.msk.msra.mxu0 %vm100_vm0, %v43_v0  ;;  %574 = vmatprep.mubr.msk.f32.mxu0 %vm100_vm0, %v44_v4  ;;  %v40_v5 = vld [vmem:[%s862_s0 + $0x60] sm:$0xff]  ;;  %v58_v8 = vld [vmem:[%s864_s2 + $0x30] sm:$0xff]  ;;  %v39_v10 = vld [vmem:[%s862_s0 + $0x58] sm:$0xff] }
   0x4   :  { %544 = vmatprep.subr.msk.mxu0 %vm100_vm0, %v42_v1  ;;  %97 = vperm.xlu0 %610, %v59_v6   ;;  %v56_v9 = vld [vmem:[%s864_s2 + $0x20] sm:$0xff] }
   0x5   :  { %87 = vperm.xlu1 %611, %v57_v7  }
   0x7   :  { %545 = vmatpush3.xpose.msk.msra.mxu0 %vm100_vm0, %v42_v1 }
   0x8   :  { %546 = vmatprep.subr.msk.mxu0 %vm100_vm0, %v41_v3  ;;  %92 = vperm.xlu0 %610, %v58_v8  }
   0x9   :  { %82 = vperm.xlu1 %611, %v56_v9  }
   0xb   :  { %547 = vmatpush3.xpose.msk.msra.mxu0 %vm100_vm0, %v41_v3 }
   0xc   :  { %548 = vmatprep.subr.msk.mxu0 %vm100_vm0, %v40_v5 }
   0xd   :  { %13 = vsyncpa [#allocation4], 0  ;;  %v55_v11 = vld [vmem:[%s864_s2 + $0x18] sm:$0xff]  ;;  %v54_v12 = vld [vmem:[%s864_s2 + $0x10] sm:$0xff]  ;;  %vm314_vm1 = vcmask 523264   ;;  %s639_s13 = smov [#allocation3]  }
   0xe   :  { %v38_v13 = vld [vmem:[%s862_s0 + $0x50] sm:$0xff]  ;;  %77 = vperm.xlu0 %610, %v55_v11   ;;  %72 = vperm.xlu1 %611, %v54_v12   ;;  %v53_v14 = vld [vmem:[%s864_s2 + $0x8] sm:$0xff]  ;;  %v52_v15 = vld [vmem:[%s864_s2] sm:$0xff]  ;;  %s469_s2 = sshll.u32 %s639_s13, 4  ;;  %s470_s2 = int_to_ptr.vmem [resolvable:$true] %s469_s2 }
   0xf   :  { %549 = vmatpush3.xpose.msk.msra.mxu0 %vm100_vm0, %v40_v5  ;;  %v37_v16 = vld [vmem:[%s862_s0 + $0x48] sm:$0xff]  ;;  %v290_v17 = vld [vmem:[%s866_s4] sm:$0xff]  ;;  %v292_v20 = vld [vmem:[%s866_s4 + $0x10] sm:$0xff]  ;;  %s616_s14 = scalar_lea.vmem %s470_s2, 16  ;;  %s620_s15 = scalar_lea.vmem %s470_s2, 32 }
  0x10   :  { %550 = vmatprep.subr.msk.mxu0 %vm100_vm0, %v39_v10  ;;  %v291_v18 = vld [vmem:[%s866_s4 + $0x8] sm:$0xff]  ;;  %v36_v19 = vld [vmem:[%s862_s0 + $0x40] sm:$0xff]  ;;  %v293_v21 = vld [vmem:[%s866_s4 + $0x18] sm:$0xff]  ;;  %p617_p0 = scmp.ne.s32.totalorder %s470_s2, %s616_s14  ;;  %p621_p1 = scmp.lt.s32.totalorder %s470_s2, %s470_s2 }
  0x11   :  { %v35_v22 = vld [vmem:[%s862_s0 + $0x38] sm:$0xff]  ;;  %v416_v23 = vld [vmem:[%s867_s5] sm:$0xff]  ;;  %v417_v24 = vld [vmem:[%s867_s5 + $0x8] sm:$0xff]  ;;  %p622_p2 = scmp.lt.s32.totalorder %s620_s15, %s616_s14 }
  0x12   :  { %67 = vperm.xlu0 %610, %v53_v14   ;;  %62 = vperm.xlu1 %611, %v52_v15   ;;  %v34_v25 = vld [vmem:[%s862_s0 + $0x30] sm:$0xff]  ;;  %v419_v27 = vld [vmem:[%s867_s5 + $0x18] sm:$0xff]  ;;  %v33_v28 = vld [vmem:[%s862_s0 + $0x28] sm:$0xff] }
  0x13   :  { %551 = vmatpush3.xpose.msk.msra.mxu0 %vm100_vm0, %v39_v10  ;;  %v418_v26 = vld [vmem:[%s867_s5 + $0x10] sm:$0xff]  ;;  %v32_v29 = vld [vmem:[%s862_s0 + $0x20] sm:$0xff]  ;;  %v31_v30 = vld [vmem:[%s862_s0 + $0x18] sm:$0xff]  ;;  %p623_p3 = por %p622_p2, %p621_p1 }
  0x14   :  { %552 = vmatprep.subr.msk.mxu0 %vm100_vm0, %v38_v13  ;;  %v30_v31 = vld [vmem:[%s862_s0 + $0x10] sm:$0xff]  ;;  %v29_v32 = vld [vmem:[%s862_s0 + $0x8] sm:$0xff]  ;;  %v28_v33 = vld [vmem:[%s862_s0] sm:$0xff] }
  0x15   :  { %v45_v34 = vld [vmem:[%s863_s1 + $0x8] sm:$0xff]  ;;  %v46_v35 = vld [vmem:[%s863_s1 + $0x10] sm:$0xff]  ;;  %v47_v36 = vld [vmem:[%s863_s1 + $0x18] sm:$0xff]  ;;  %p624_p4 = pnand %p623_p3, %p617_p0 }
  0x16   :  { %296 = vperm.xlu0 %610, %v290_v17   ;;  %301 = vperm.xlu1 %611, %v291_v18   ;;  %v48_v37 = vld [vmem:[%s863_s1 + $0x20] sm:$0xff]  ;;  %v49_v38 = vld [vmem:[%s863_s1 + $0x28] sm:$0xff]  ;;  %v50_v39 = vld [vmem:[%s863_s1 + $0x30] sm:$0xff] }
  0x17   :  { %553 = vmatpush3.xpose.msk.msra.mxu0 %vm100_vm0, %v38_v13  ;;  %v51_v40 = vld [vmem:[%s863_s1 + $0x38] sm:$0xff]  ;;  %v286_v41 = vld [vmem:[%s865_s3] sm:$0xff]  ;;  %v287_v10 = vld [vmem:[%s865_s3 + $0x8] sm:$0xff] }
  0x18   :  { %554 = vmatprep.subr.msk.mxu0 %vm100_vm0, %v37_v16  ;;  %602 = vmatprep.mubr.msk.f32.mxu1 %vm314_vm1, %v286_v41  ;;  %v288_v11 = vld [vmem:[%s865_s3 + $0x10] sm:$0xff]  ;;  %v289_v12 = vld [vmem:[%s865_s3 + $0x18] sm:$0xff] }
  0x1a   :  { %306 = vperm.xlu0 %610, %v292_v20   ;;  %311 = vperm.xlu1 %611, %v293_v21  }
  0x1b   :  { %555 = vmatpush3.xpose.msk.msra.mxu0 %vm100_vm0, %v37_v16 }
  0x1c   :  { %556 = vmatprep.subr.msk.mxu0 %vm100_vm0, %v36_v19 }
  0x1e   :  { %422 = vperm.xlu0 %610, %v416_v23   ;;  %427 = vperm.xlu1 %611, %v417_v24  }
  0x1f   :  { %557 = vmatpush3.xpose.msk.msra.mxu0 %vm100_vm0, %v36_v19 }
  0x20   :  { %558 = vmatprep.subr.msk.mxu0 %vm100_vm0, %v35_v22 }
  0x22   :  { %432 = vperm.xlu0 %610, %v418_v26   ;;  %437 = vperm.xlu1 %611, %v419_v27  }
  0x23   :  { %559 = vmatpush3.xpose.msk.msra.mxu0 %vm100_vm0, %v35_v22 }
  0x24   :  { %560 = vmatprep.subr.msk.mxu0 %vm100_vm0, %v34_v25 }
  0x27   :  { %561 = vmatpush3.xpose.msk.msra.mxu0 %vm100_vm0, %v34_v25 }
  0x28   :  { %562 = vmatprep.subr.msk.mxu0 %vm100_vm0, %v33_v28 }
  0x2b   :  { %563 = vmatpush3.xpose.msk.msra.mxu0 %vm100_vm0, %v33_v28 }
  0x2c   :  { %564 = vmatprep.subr.msk.mxu0 %vm100_vm0, %v32_v29 }
  0x2f   :  { %565 = vmatpush3.xpose.msk.msra.mxu0 %vm100_vm0, %v32_v29 }
  0x30   :  { %566 = vmatprep.subr.msk.mxu0 %vm100_vm0, %v31_v30 }
  0x33   :  { %567 = vmatpush3.xpose.msk.msra.mxu0 %vm100_vm0, %v31_v30 }
  0x34   :  { %568 = vmatprep.subr.msk.mxu0 %vm100_vm0, %v30_v31 }
  0x37   :  { %569 = vmatpush3.xpose.msk.msra.mxu0 %vm100_vm0, %v30_v31 }
  0x38   :  { %570 = vmatprep.subr.msk.mxu0 %vm100_vm0, %v29_v32 }
  0x3b   :  { %571 = vmatpush3.xpose.msk.msra.mxu0 %vm100_vm0, %v29_v32 }
  0x3c   :  { %572 = vmatprep.subr.msk.mxu0 %vm100_vm0, %v28_v33 }
  0x3f   :  { %573 = vmatpush3.xpose.msk.msra.mxu0 %vm100_vm0, %v28_v33 }
  0x42   :  { %575 = vmatmul.mubr.msk.f32.vlgmr.msra.gmra.mxu0 %vm100_vm0, %v45_v34 }
  0x43   :  { %577 = vmatprep.mubr.msk.f32.mxu0 %vm100_vm0, %v46_v35 }
  0x46   :  { %578 = vmatmul.mubr.msk.f32.gmra.mxu0 %vm100_vm0, %v47_v36 }
  0x47   :  { %580 = vmatprep.mubr.msk.f32.mxu0 %vm100_vm0, %v48_v37 }
  0x4a   :  { %581 = vmatmul.mubr.msk.f32.gmra.mxu0 %vm100_vm0, %v49_v38 }
  0x4b   :  { %583 = vmatprep.mubr.msk.f32.mxu0 %vm100_vm0, %v50_v39 }
  0x4e   :  { %584 = vmatmul.mubr.msk.f32.gmra.mxu0 %vm100_vm0, %v51_v40 }
  0x7f   :  { %v98_v44 = vpop.permute.xlu0 %97 }
  0x80   :  { %v88_v46 = vpop.permute.xlu1 %87 }
  0x83   :  { %v93_v49 = vpop.permute.xlu0 %92 }
  0x84   :  { %v83_v51 = vpop.permute.xlu1 %82 }
  0x89   :  { %v78_v58 = vpop.permute.xlu0 %77  ;;  %v73_v61 = vpop.permute.xlu1 %72 }
  0x8d   :  { %v68_v2 = vpop.permute.xlu0 %67  ;;  %v63_v5 = vpop.permute.xlu1 %62 }
  0x91   :  { %v297_v13 = vpop.permute.xlu0 %296  ;;  %v302_v14 = vpop.permute.xlu1 %301 }
  0x95   :  { %v307_v15 = vpop.permute.xlu0 %306  ;;  %v312_v16 = vpop.permute.xlu1 %311 }
  0x99   :  { %v423_v21 = vpop.permute.xlu0 %422  ;;  %v428_v26 = vpop.permute.xlu1 %427 }
  0x9d   :  { %v433_v33 = vpop.permute.xlu0 %432  ;;  %v438_v36 = vpop.permute.xlu1 %437 }
 0x102   :  { %v576_v42 = vpop.f32.mrf.mxu0 }
 0x103   :  { %v245_v3 = vadd.f32 %v576_v42, %v68_v2 }
 0x104   :  { %v239_v43 = vpop.f32.mrf.mxu0 }
 0x105   :  { %v240_v6 = vadd.f32 %v239_v43, %v63_v5  ;;  %v279_v8 = vmax.f32 %v245_v3, 0.0 }
 0x106   :  { %v579_v45 = vpop.f32.mrf.mxu0 }
 0x107   :  { %v255_v62 = vadd.f32 %v579_v45, %v78_v58  ;;  %v278_v9 = vmax.f32 %v240_v6, 0.0  ;;  %v454_v45 = vstv %s868_s6 }
 0x108   :  { %v249_v47 = vpop.f32.mrf.mxu0 }
 0x109   :  { %v250_v0 = vadd.f32 %v249_v47, %v73_v61  ;;  %v281_v4 = vmax.f32 %v255_v62, 0.0 }
 0x10a   :  { %v582_v48 = vpop.f32.mrf.mxu0 }
 0x10b   :  { %v265_v55 = vadd.f32 %v582_v48, %v88_v46  ;;  %v280_v7 = vmax.f32 %v250_v0, 0.0 }
 0x10c   :  { %v259_v50 = vpop.f32.mrf.mxu0 }
 0x10d   :  { %v260_v59 = vadd.f32 %v259_v50, %v83_v51  ;;  %v283_v63 = vmax.f32 %v265_v55, 0.0 }
 0x10e   :  { %v585_v52 = vpop.f32.mrf.mxu0 }
 0x10f   :  { %v275_v53 = vadd.f32 %v585_v52, %v98_v44  ;;  %v282_v1 = vmax.f32 %v260_v59, 0.0 }
 0x110   :  { %v269_v54 = vpop.f32.mrf.mxu0 }
 0x111   :  { %v285_v56 = vmax.f32 %v275_v53, 0.0  ;;  %v270_v57 = vadd.f32 %v269_v54, %v93_v49 }
 0x113   :  { %v284_v60 = vmax.f32 %v270_v57, 0.0  ;;  %586 = vmatprep.subr.mxu1 %v285_v56 }
 0x114   :  { %587 = vmatpush3.msra.mxu1 %v285_v56 }
 0x115   :  { %588 = vmatprep.subr.mxu1 %v284_v60 }
 0x116   :  { %589 = vmatpush3.msra.mxu1 %v284_v60 }
 0x117   :  { %590 = vmatprep.subr.mxu1 %v283_v63 }
 0x118   :  { %591 = vmatpush3.msra.mxu1 %v283_v63 }
 0x119   :  { %592 = vmatprep.subr.mxu1 %v282_v1 }
 0x11a   :  { %593 = vmatpush3.msra.mxu1 %v282_v1 }
 0x11b   :  { %594 = vmatprep.subr.mxu1 %v281_v4 }
 0x11c   :  { %595 = vmatpush3.msra.mxu1 %v281_v4 }
 0x11d   :  { %596 = vmatprep.subr.mxu1 %v280_v7 }
 0x11e   :  { %597 = vmatpush3.msra.mxu1 %v280_v7 }
 0x11f   :  { %598 = vmatprep.subr.mxu1 %v279_v8 }
 0x120   :  { %599 = vmatpush3.msra.mxu1 %v279_v8 }
 0x121   :  { %600 = vmatprep.subr.mxu1 %v278_v9 }
 0x122   :  { %601 = vmatpush3.msra.mxu1 %v278_v9 }
 0x123   :  { %603 = vmatmul.mubr.msk.f32.vlgmr.msra.gmra.mxu1 %vm314_vm1, %v287_v10 }
 0x124   :  { %605 = vmatprep.mubr.msk.f32.mxu1 %vm314_vm1, %v288_v11 }
 0x127   :  { %606 = vmatmul.mubr.msk.f32.gmra.mxu1 %vm314_vm1, %v289_v12 }
 0x1e3   :  { %v604_v17 = vpop.f32.mrf.mxu1 }
 0x1e4   :  { %v399_v18 = vadd.f32 %v604_v17, %v302_v14 }
 0x1e5   :  { %v393_v19 = vpop.f32.mrf.mxu1 }
 0x1e6   :  { %v394_v20 = vadd.f32 %v393_v19, %v297_v13  ;;  %v413_v23 = vmax.f32 %v399_v18, 0.0 }
 0x1e7   :  { %v607_v22 = vpop.f32.mrf.mxu1 }
 0x1e8   :  { %v412_v24 = vmax.f32 %v394_v20, 0.0  ;;  %v409_v25 = vadd.f32 %v607_v22, %v312_v16  ;;  %v441_v30 = vmul.f32 %v428_v26, %v413_v23 }
 0x1e9   :  { %v403_v27 = vpop.f32.mrf.mxu1 }
 0x1ea   :  { %v440_v28 = vmul.f32 %v423_v21, %v412_v24  ;;  %v404_v29 = vadd.f32 %v403_v27, %v307_v15  ;;  %v415_v31 = vmax.f32 %v409_v25, 0.0 }
 0x1ec   :  { %v414_v32 = vmax.f32 %v404_v29, 0.0  ;;  %v444_v34 = vadd.f32 %v441_v30, %v440_v28  ;;  %v443_v37 = vmul.f32 %v438_v36, %v415_v31 }
 0x1ee   :  { %v442_v35 = vmul.f32 %v433_v33, %v414_v32 }
 0x1f0   :  { %v445_v38 = vadd.f32 %v444_v34, %v442_v35 }
 0x1f2   :  { %v446_v39 = vadd.f32 %v445_v38, %v443_v37 }
 0x1f4   :  { %v447_v40 = vrot.slane %v446_v39, 4 }
 0x1f6   :  { %v448_v41 = vadd.f32 %v447_v40, %v446_v39 }
 0x1f8   :  { %v449_v42 = vrot.slane %v448_v41, 2 }
 0x1fa   :  { %v450_v43 = vadd.f32 %v449_v42, %v448_v41 }
 0x1fc   :  { %v451_v44 = vrot.slane %v450_v43, 1 }
 0x1fe   :  { %v452_v46 = vadd.f32 %v451_v44, %v450_v43 }
 0x200   :  { %v455_v47 = vadd.f32 %v454_v45, %v452_v46 }
 0x202   :  { %v505_v48 = vmul.f32 -1.442695, %v455_v47 }
 0x204   :  { %612 = vpow2.f32 %v505_v48 }
 0x211   :  { %v613_v49 = vpop.eup %612 }
 0x212   :  { %v459_v50 = vadd.f32 1.0, %v613_v49 }
 0x214   :  { %614 = vrcp.f32 %v459_v50 }
 0x221   :  { %v615_v51 = vpop.eup %614 }
 0x222   :  { %462 = vst [vmem:[#allocation3] sm:$0x1] %v615_v51 }
 0x223   :  { %627 = shalt.err (!%p624_p4)
}
 0x224   :  { %472 = dma.vmem_to_hbm [thread:$0]  %s470_s2, 16, %s869_s7, [#allocation4]  }
 0x225   :  { %636 = dma.done.wait [#allocation4], 16  }
 0x226   :  { %637 = vsyncadd [#allocation4], 4294967280 }
 0x227   :  { %476 = vsyncpa [#allocation4], 1 }

</bundles_post_ra>
